<compile_context>
chip_gen: v7x
topology: tpu7x:2x2x1
jax: 0.10.0
libtpu: 0.0.40
codegen_flags: <defaults>
</compile_context>

<pallas_src>
import jax
import jax.numpy as jnp
from jax import lax
from jax.experimental import pallas as pl
from jax.experimental.pallas import tpu as pltpu


# ------------- Pallas kernel: fused Linear-SiLU-Linear-SiLU-Linear(head) -------------

def _graph_dec_kernel(h_ref, w1_ref, b1_ref, w2_ref, b2_ref, w3t_ref, b3_ref, o_ref):
    # layer 1: Linear + SiLU   (bf16 MXU operands, f32 accumulate / activation)
    x = h_ref[...].astype(jnp.bfloat16)
    z = jnp.dot(x, w1_ref[...], preferred_element_type=jnp.float32) + b1_ref[...]
    z = z * jax.nn.sigmoid(z)                       # SiLU in f32 (EUP sigmoid)
    # layer 2: Linear + SiLU
    z = jnp.dot(z.astype(jnp.bfloat16), w2_ref[...],
                preferred_element_type=jnp.float32) + b2_ref[...]
    z = z * jax.nn.sigmoid(z)
    # layer 3 (head), emitted TRANSPOSED as (out_nf, row_tile): contract w3t's K
    # against z's K so batch rows land on lanes -> tiny lane-dense output slab.
    o_ref[...] = lax.dot_general(
        w3t_ref[...], z.astype(jnp.bfloat16),
        dimension_numbers=(((1,), (1,)), ((), ())),
        preferred_element_type=jnp.float32) + b3_ref[...]


# ---------------- parameter preparation (run ONCE per parameter set) ----------------

def prepare_params(params):
    """Cast weights to bf16 and pre-transpose the head once, outside the hot path."""
    return dict(
        w1=params["w1"].astype(jnp.bfloat16),                  # (in_nf, hidden)
        b1=params["b1"].reshape(1, -1).astype(jnp.float32),    # (1, hidden)
        w2=params["w2"].astype(jnp.bfloat16),                  # (hidden, hidden)
        b2=params["b2"].reshape(1, -1).astype(jnp.float32),    # (1, hidden)
        w3t=params["w3"].T.astype(jnp.bfloat16),               # (2, hidden)
        b3=params["b3"].reshape(-1, 1).astype(jnp.float32),    # (2, 1) column bias
    )


def _pick_row_tile(B):
    # <=256 rows: one grid step with full-array block dims (always legal).
    # >256 rows: 256-row tiles -> fills the 256-row MXU on v6e/v7x (2 passes on
    # v5e's 128-row MXU), guarantees >=2 grid steps so both v7x TCs get work.
    return B if B <= 256 else 256


# ---------------- wrapper ----------------

def prediction_kl_c_forward(h, prep):
    """h: [..., in_nf] float32. prep: output of prepare_params. Returns graph_dec(h).squeeze(1)."""
    lead = h.shape[:-1]
    in_nf = h.shape[-1]
    w1, b1, w2, b2, w3t, b3 = (prep["w1"], prep["b1"], prep["w2"],
                               prep["b2"], prep["w3t"], prep["b3"])
    hidden_nf = w1.shape[1]
    out_nf = w3t.shape[0]                            # == 2

    h2 = h.reshape(-1, in_nf).astype(jnp.float32)
    B = h2.shape[0]

    row_tile = _pick_row_tile(B)
    grid = (pl.cdiv(B, row_tile),)                   # ragged last tile: rows are
                                                     # independent, OOB stores masked

    row_in = pl.BlockSpec((row_tile, in_nf), lambda i: (i, 0))
    out_spec = pl.BlockSpec((out_nf, row_tile), lambda i: (0, i))

    def full(shape):                                 # resident across grid steps
        return pl.BlockSpec(shape, lambda i: (0, 0))

    flops = 2 * B * (in_nf * hidden_nf + hidden_nf * hidden_nf + hidden_nf * out_nf)
    transcendentals = 2 * B * hidden_nf              # two sigmoids per row
    bytes_accessed = (B * in_nf * 4
                      + (w1.size + w2.size + w3t.size) * 2
                      + (b1.size + b2.size + b3.size) * 4
                      + out_nf * B * 4)

    # rough VMEM budget (double-buffered tiles/weights + f32 intermediates);
    # only raise the scoped limit when the defaults would be too small.
    est_vmem = (2 * ((w1.size + w2.size + w3t.size) * 2
                     + (b1.size + b2.size + b3.size) * 4
                     + row_tile * in_nf * 4 + out_nf * row_tile * 4)
                + 4 * row_tile * hidden_nf * 4)
    vmem_limit = min(max(est_vmem, 32 << 20), 64 << 20)
    # TODO(synk): for hidden_nf >= ~2048 on v7x (64 MiB VMEM), tile w2 over a
    # K grid axis ("arbitrary") instead of keeping it fully resident.

    out_t = pl.pallas_call(
        _graph_dec_kernel,
        out_shape=jax.ShapeDtypeStruct((out_nf, B), jnp.float32),
        grid=grid,
        in_specs=[row_in,
                  full(w1.shape), full(b1.shape),
                  full(w2.shape), full(b2.shape),
                  full(w3t.shape), full(b3.shape)],
        out_specs=out_spec,
        compiler_params=pltpu.CompilerParams(
            dimension_semantics=("parallel",),       # independent row tiles
            vmem_limit_bytes=vmem_limit),
        cost_estimate=pl.CostEstimate(flops=flops,
                                      transcendentals=transcendentals,
                                      bytes_accessed=bytes_accessed),
    )(h2, w1, b1, w2, b2, w3t, b3)

    pred = out_t.T.reshape(lead + (out_nf,))
    # torch .squeeze(1): only removes dim 1 if it has size 1 (size 2 here -> no-op)
    if pred.ndim > 1 and pred.shape[1] == 1:
        pred = jnp.squeeze(pred, axis=1)
    return pred


# ---------------- pure-JAX f32 reference (semantics check) ----------------

def prediction_kl_c_reference(h, params):
    silu = lambda x: x * jax.nn.sigmoid(x)
    z = silu(h @ params["w1"] + params["b1"])
    z = silu(z @ params["w2"] + params["b2"])
    pred = z @ params["w3"] + params["b3"]
    if pred.ndim > 1 and pred.shape[1] == 1:
        pred = jnp.squeeze(pred, axis=1)
    return pred


# ---------------- deterministic parameter init (torch nn.Linear style) ----------------

def _init_linear(key, fan_in, fan_out):
    kw, kb = jax.random.split(key)
    bound = 1.0 / float(fan_in) ** 0.5
    w = jax.random.uniform(kw, (fan_in, fan_out), jnp.float32, -bound, bound)
    b = jax.random.uniform(kb, (1, fan_out), jnp.float32, -bound, bound)
    return w, b


def make_params(key, in_nf, hidden_nf):
    k1, k2, k3 = jax.random.split(key, 3)
    w1, b1 = _init_linear(k1, in_nf, hidden_nf)
    w2, b2 = _init_linear(k2, hidden_nf, hidden_nf)
    w3, b3 = _init_linear(k3, hidden_nf, 2)
    return dict(w1=w1, b1=b1, w2=w2, b2=b2, w3=w3, b3=b3)


# ---------------- main ----------------

if __name__ == "__main__":
    in_nf, hidden_nf = 32, 64

    key = jax.random.PRNGKey(0)
    k_par, k_h1, k_h2 = jax.random.split(key, 3)
    params = make_params(k_par, in_nf, hidden_nf)
    prep = prepare_params(params)                   # one-time weight cast/pack

    # small batch: single grid step, full-array blocks
    B = 16
    h = jax.random.normal(k_h1, (B, in_nf), jnp.float32)
    out = jax.block_until_ready(prediction_kl_c_forward(h, prep))
    ref = jax.block_until_ready(prediction_kl_c_reference(h, params))
    assert out.shape == (B, 2), out.shape
    assert jnp.allclose(out, ref, atol=2e-2, rtol=2e-2), "mismatch vs reference (B=16)"

    # larger batch: multi-step grid with a ragged (masked) last tile
    B2 = 300
    h2 = jax.random.normal(k_h2, (B2, in_nf), jnp.float32)
    out2 = jax.block_until_ready(prediction_kl_c_forward(h2, prep))
    ref2 = jax.block_until_ready(prediction_kl_c_reference(h2, params))
    assert out2.shape == (B2, 2), out2.shape
    assert jnp.allclose(out2, ref2, atol=2e-2, rtol=2e-2), "mismatch vs reference (B=300)"

    print("KERNEL_OK")
</pallas_src>

<mosaic_0001>
module attributes {stable_mosaic.version = 11 : i64} {
  func.func @_graph_dec_kernel(%arg0: i32, %arg1: memref<16x32xf32, #tpu.memory_space<vmem>>, %arg2: memref<32x64xbf16, #tpu.memory_space<vmem>>, %arg3: memref<1x64xf32, #tpu.memory_space<vmem>>, %arg4: memref<64x64xbf16, #tpu.memory_space<vmem>>, %arg5: memref<1x64xf32, #tpu.memory_space<vmem>>, %arg6: memref<2x64xbf16, #tpu.memory_space<vmem>>, %arg7: memref<2x1xf32, #tpu.memory_space<vmem>>, %arg8: memref<2x16xf32, #tpu.memory_space<vmem>>) attributes {dimension_semantics = [#tpu.dimension_semantics<parallel>], iteration_bounds = array<i64: 1>, scalar_prefetch = 0 : i64, scratch_operands = 0 : i64, tpu.core_type = #tpu.core_type<tc>, window_params = [{transform_indices = @transform_0, window_bounds = array<i64: 16, 32>}, {pipeline_mode = #tpu.pipeline_mode<synchronous>, transform_indices = @transform_1, window_bounds = array<i64: 32, 64>}, {pipeline_mode = #tpu.pipeline_mode<synchronous>, transform_indices = @transform_2, window_bounds = array<i64: 1, 64>}, {pipeline_mode = #tpu.pipeline_mode<synchronous>, transform_indices = @transform_3, window_bounds = array<i64: 64, 64>}, {pipeline_mode = #tpu.pipeline_mode<synchronous>, transform_indices = @transform_4, window_bounds = array<i64: 1, 64>}, {pipeline_mode = #tpu.pipeline_mode<synchronous>, transform_indices = @transform_5, window_bounds = array<i64: 2, 64>}, {pipeline_mode = #tpu.pipeline_mode<synchronous>, transform_indices = @transform_6, window_bounds = array<i64: 2, 1>}, {transform_indices = @transform_7, window_bounds = array<i64: 2, 16>}]} {
    %c0 = arith.constant 0 : index
    %c0_0 = arith.constant 0 : index
    %0 = vector.load %arg1[%c0, %c0_0] : memref<16x32xf32, #tpu.memory_space<vmem>>, vector<16x32xf32>
    %1 = arith.truncf %0 : vector<16x32xf32> to vector<16x32xbf16>
    %c0_1 = arith.constant 0 : index
    %c0_2 = arith.constant 0 : index
    %2 = vector.load %arg2[%c0_1, %c0_2] : memref<32x64xbf16, #tpu.memory_space<vmem>>, vector<32x64xbf16>
    %cst = arith.constant dense<0.000000e+00> : vector<16x64xf32>
    %3 = tpu.matmul %1, %2, %cst {dimension_numbers = #tpu.dot_dimension_numbers<[1], [0], [0], [1], [0, 0, 1, 1], [], []>} : vector<16x32xbf16>, vector<32x64xbf16>, vector<16x64xf32> -> vector<16x64xf32>
    %c0_3 = arith.constant 0 : index
    %c0_4 = arith.constant 0 : index
    %4 = vector.load %arg3[%c0_3, %c0_4] : memref<1x64xf32, #tpu.memory_space<vmem>>, vector<1x64xf32>
    %5 = vector.broadcast %4 : vector<1x64xf32> to vector<16x64xf32>
    %6 = arith.addf %3, %5 : vector<16x64xf32>
    %7 = arith.negf %6 : vector<16x64xf32>
    %8 = math.exp %7 : vector<16x64xf32>
    %cst_5 = arith.constant 1.000000e+00 : f32
    %9 = vector.broadcast %cst_5 : f32 to vector<16x64xf32>
    %10 = arith.addf %9, %8 : vector<16x64xf32>
    %11 = arith.divf %9, %10 : vector<16x64xf32>
    %12 = arith.mulf %6, %11 : vector<16x64xf32>
    %13 = arith.truncf %12 : vector<16x64xf32> to vector<16x64xbf16>
    %c0_6 = arith.constant 0 : index
    %c0_7 = arith.constant 0 : index
    %14 = vector.load %arg4[%c0_6, %c0_7] : memref<64x64xbf16, #tpu.memory_space<vmem>>, vector<64x64xbf16>
    %cst_8 = arith.constant dense<0.000000e+00> : vector<16x64xf32>
    %15 = tpu.matmul %13, %14, %cst_8 {dimension_numbers = #tpu.dot_dimension_numbers<[1], [0], [0], [1], [0, 0, 1, 1], [], []>} : vector<16x64xbf16>, vector<64x64xbf16>, vector<16x64xf32> -> vector<16x64xf32>
    %c0_9 = arith.constant 0 : index
    %c0_10 = arith.constant 0 : index
    %16 = vector.load %arg5[%c0_9, %c0_10] : memref<1x64xf32, #tpu.memory_space<vmem>>, vector<1x64xf32>
    %17 = vector.broadcast %16 : vector<1x64xf32> to vector<16x64xf32>
    %18 = arith.addf %15, %17 : vector<16x64xf32>
    %19 = arith.negf %18 : vector<16x64xf32>
    %20 = math.exp %19 : vector<16x64xf32>
    %cst_11 = arith.constant 1.000000e+00 : f32
    %21 = vector.broadcast %cst_11 : f32 to vector<16x64xf32>
    %22 = arith.addf %21, %20 : vector<16x64xf32>
    %23 = arith.divf %21, %22 : vector<16x64xf32>
    %24 = arith.mulf %18, %23 : vector<16x64xf32>
    %c0_12 = arith.constant 0 : index
    %c0_13 = arith.constant 0 : index
    %25 = vector.load %arg6[%c0_12, %c0_13] : memref<2x64xbf16, #tpu.memory_space<vmem>>, vector<2x64xbf16>
    %26 = arith.truncf %24 : vector<16x64xf32> to vector<16x64xbf16>
    %cst_14 = arith.constant dense<0.000000e+00> : vector<2x16xf32>
    %27 = tpu.matmul %25, %26, %cst_14 {dimension_numbers = #tpu.dot_dimension_numbers<[1], [1], [0], [0], [0, 0, 1, 0], [], []>} : vector<2x64xbf16>, vector<16x64xbf16>, vector<2x16xf32> -> vector<2x16xf32>
    %c0_15 = arith.constant 0 : index
    %c0_16 = arith.constant 0 : index
    %28 = vector.load %arg7[%c0_15, %c0_16] : memref<2x1xf32, #tpu.memory_space<vmem>>, vector<2x1xf32>
    %29 = vector.broadcast %28 : vector<2x1xf32> to vector<2x16xf32>
    %30 = arith.addf %27, %29 : vector<2x16xf32>
    %c0_17 = arith.constant 0 : index
    %c0_18 = arith.constant 0 : index
    %31 = vector.load %arg8[%c0_17, %c0_18] : memref<2x16xf32, #tpu.memory_space<vmem>>, vector<2x16xf32>
    tpu.vector_store %arg8[%c0_17, %c0_18], %30 {strides = array<i32>} : memref<2x16xf32, #tpu.memory_space<vmem>>, vector<2x16xf32>,
    return
  }
  func.func @transform_0(%arg0: i32) -> (i32, i32) {
    %c0_i32 = arith.constant 0 : i32
    %c0_i32_0 = arith.constant 0 : i32
    return %arg0, %c0_i32 : i32, i32
  }
  func.func @transform_1(%arg0: i32) -> (i32, i32) {
    %c0_i32 = arith.constant 0 : i32
    %c0_i32_0 = arith.constant 0 : i32
    %c0_i32_1 = arith.constant 0 : i32
    return %c0_i32, %c0_i32_0 : i32, i32
  }
  func.func @transform_2(%arg0: i32) -> (i32, i32) {
    %c0_i32 = arith.constant 0 : i32
    %c0_i32_0 = arith.constant 0 : i32
    %c0_i32_1 = arith.constant 0 : i32
    return %c0_i32, %c0_i32_0 : i32, i32
  }
  func.func @transform_3(%arg0: i32) -> (i32, i32) {
    %c0_i32 = arith.constant 0 : i32
    %c0_i32_0 = arith.constant 0 : i32
    %c0_i32_1 = arith.constant 0 : i32
    return %c0_i32, %c0_i32_0 : i32, i32
  }
  func.func @transform_4(%arg0: i32) -> (i32, i32) {
    %c0_i32 = arith.constant 0 : i32
    %c0_i32_0 = arith.constant 0 : i32
    %c0_i32_1 = arith.constant 0 : i32
    return %c0_i32, %c0_i32_0 : i32, i32
  }
  func.func @transform_5(%arg0: i32) -> (i32, i32) {
    %c0_i32 = arith.constant 0 : i32
    %c0_i32_0 = arith.constant 0 : i32
    %c0_i32_1 = arith.constant 0 : i32
    return %c0_i32, %c0_i32_0 : i32, i32
  }
  func.func @transform_6(%arg0: i32) -> (i32, i32) {
    %c0_i32 = arith.constant 0 : i32
    %c0_i32_0 = arith.constant 0 : i32
    %c0_i32_1 = arith.constant 0 : i32
    return %c0_i32, %c0_i32_0 : i32, i32
  }
  func.func @transform_7(%arg0: i32) -> (i32, i32) {
    %c0_i32 = arith.constant 0 : i32
    %c0_i32_0 = arith.constant 0 : i32
    return %c0_i32, %arg0 : i32, i32
  }
}

</mosaic_0001>

<bundles_post_ra>
// kernel: tpu_custom_call.1
= control target key start
LH: loop header
LB: loop body
LE: loop exit
PB: predicated region body
PF: predicated region fallthrough
CT: control target
= control target key end

     0   :  { %12 = vsyncpa [#allocation3], 0  ;;  %s624_s0 = inlined_call_operand.hbm [shape: f32[16,32], index: 0, kind: input, shape index: {}]   ;;  %s625_s1 = inlined_call_operand.hbm [shape: bf16[32,64], index: 1, kind: input, shape index: {}]   ;;  %s626_s2 = inlined_call_operand.vmem [shape: f32[1,64], index: 2, kind: input, shape index: {}]   ;;  %s627_s3 = inlined_call_operand.hbm [shape: bf16[64,64], index: 3, kind: input, shape index: {}]   ;;  %s628_s4 = inlined_call_operand.vmem [shape: f32[1,64], index: 4, kind: input, shape index: {}]   ;;  %s629_s5 = inlined_call_operand.vmem [shape: bf16[2,64], index: 5, kind: input, shape index: {}]   ;;  %s630_s6 = inlined_call_operand.vmem [shape: f32[2,1], index: 6, kind: input, shape index: {}]   ;;  %s631_s7 = inlined_call_operand.hbm [shape: f32[2,16], index: 7, kind: output, shape index: {}]  }
   0x1   :  { %13 = vsyncpa [#allocation6], 0 }
   0x2   :  { %14 = vsyncpa [#allocation4], 0  ;;  %s504_s24 = smov [#allocation5]   ;;  %s410_s28 = scalar_lea.hbm %s625_s1, 256 }
   0x3   :  { %s32_s25 = sshll.u32 %s504_s24, 4  ;;  %p411_p0 = scmp.ne.s32.totalorder %s625_s1, %s410_s28  ;;  %s33_s25 = int_to_ptr.vmem [resolvable:$true] %s32_s25 }
   0x4   :  { %p414_p1 = scmp.lt.u32.totalorder %s410_s28, %s625_s1 }
   0x6   :  { %p416_p2 = pnand %p414_p1, %p411_p0 }
   0x8   :  { %419 = shalt.err (!%p416_p2)
}
   0x9   :  { %s420_s10 = scalar_lea.vmem %s33_s25, 256  ;;  %p425_p4 = scmp.lt.s32.totalorder %s33_s25, %s33_s25 }
   0xa   :  { %p421_p3 = scmp.ne.s32.totalorder %s33_s25, %s420_s10  ;;  %p426_p5 = scmp.lt.s32.totalorder %s420_s10, %s420_s10 }
   0xc   :  { %p427_p6 = por %p426_p5, %p425_p4 }
   0xe   :  { %p428_p7 = pnand %p427_p6, %p421_p3 }
  0x10   :  { %431 = shalt.err (!%p428_p7)
}
  0x11   :  { %s505_s11 = smov 64   ;;  %s506_s12 = smov 4  }
  0x12   :  { %38 = dma.hbm_to_vmem [thread:$0]  %s625_s1, 256, %s33_s25, [#allocation6], %s505_s11, %s505_s11, %s506_s12  }
  0x13   :  { %s507_s15 = smov [#allocation2]   ;;  %s432_s19 = scalar_lea.hbm %s624_s0, 256 }
  0x14   :  { %s20_s16 = sshll.u32 %s507_s15, 4  ;;  %p433_p8 = scmp.ne.s32.totalorder %s624_s0, %s432_s19  ;;  %s21_s16 = int_to_ptr.vmem [resolvable:$true] %s20_s16 }
  0x15   :  { %p436_p9 = scmp.lt.u32.totalorder %s432_s19, %s624_s0 }
  0x17   :  { %p438_p10 = pnand %p436_p9, %p433_p8 }
  0x19   :  { %441 = shalt.err (!%p438_p10)
}
  0x1a   :  { %s442_s24 = scalar_lea.vmem %s21_s16, 256  ;;  %p447_p12 = scmp.lt.s32.totalorder %s21_s16, %s21_s16 }
  0x1b   :  { %p443_p11 = scmp.ne.s32.totalorder %s21_s16, %s442_s24  ;;  %p448_p13 = scmp.lt.s32.totalorder %s442_s24, %s442_s24 }
  0x1d   :  { %p449_p0 = por %p448_p13, %p447_p12 }
  0x1f   :  { %p450_p1 = pnand %p449_p0, %p443_p11 }
  0x21   :  { %453 = shalt.err (!%p450_p1)
}
  0x22   :  { %s508_s1 = smov 128   ;;  %s509_s25 = smov 8  }
  0x23   :  { %26 = dma.hbm_to_vmem [thread:$0]  %s624_s0, 256, %s21_s16, [#allocation3], %s508_s1, %s508_s1, %s509_s25  }
  0x24   :  { %s510_s28 = smov [#allocation7]   ;;  %s454_s9 = scalar_lea.hbm %s627_s3, 512 }
  0x25   :  { %s46_s29 = sshll.u32 %s510_s28, 4  ;;  %p455_p2 = scmp.ne.s32.totalorder %s627_s3, %s454_s9  ;;  %s47_s29 = int_to_ptr.vmem [resolvable:$true] %s46_s29 }
  0x26   :  { %p458_p3 = scmp.lt.u32.totalorder %s454_s9, %s627_s3 }
  0x28   :  { %p460_p4 = pnand %p458_p3, %p455_p2 }
  0x2a   :  { %463 = shalt.err (!%p460_p4)
}
  0x2b   :  { %s464_s17 = scalar_lea.vmem %s47_s29, 512  ;;  %p469_p6 = scmp.lt.s32.totalorder %s47_s29, %s47_s29 }
  0x2c   :  { %p465_p5 = scmp.ne.s32.totalorder %s47_s29, %s464_s17  ;;  %p470_p7 = scmp.lt.s32.totalorder %s464_s17, %s464_s17 }
  0x2e   :  { %p471_p8 = por %p470_p7, %p469_p6 }
  0x30   :  { %p472_p9 = pnand %p471_p8, %p465_p5 }
  0x32   :  { %475 = shalt.err (!%p472_p9)
}
  0x33   :  { %52 = dma.hbm_to_vmem [thread:$0]  %s627_s3, 512, %s47_s29, [#allocation6], %s505_s11, %s505_s11, %s506_s12  }
  0x34   :  { %498 = dma.done.wait [#allocation3], 256  }
  0x35   :  { %499 = vsyncadd [#allocation3], 4294967040 }
  0x36   :  { %500 = dma.done.wait [#allocation6], 768  }
  0x37   :  { %501 = vsyncadd [#allocation6], 4294966528  ;;  %v511_v0 = vmov 0.0   ;;  %vm512_vm0 = vmmov 0   ;;  %v388_v1 = vld [vmem:[#allocation5] sm:$0xff]   ;;  %v389_v2 = vld [vmem:[#allocation5 + $0x8] sm:$0xff]  }
  0x38   :  { %350 = vmatprep.subr.bf16.mxu0 %v511_v0  ;;  %354 = vmatprep.mubr.msk.bf16.mxu0 %vm512_vm0, %v511_v0  ;;  %v69_v3 = vld [vmem:[#allocation2] sm:$0xff]  ;;  %v70_v4 = vld [vmem:[#allocation2 + $0x8] sm:$0xff]  ;;  %vm95_vm1 = vcmask 261120   ;;  %v392_v8 = vld [vmem:[#allocation7 + $0x10] sm:$0xff]   ;;  %vm194_vm2 = vcmask 523264   ;;  %v513_v29 = vmov 0  }
  0x39   :  { %358 = vmatprep.subr.bf16.mxu1 %v511_v0  ;;  %366 = vmatprep.mubr.msk.bf16.mxu1 %vm512_vm0, %v511_v0  ;;  %v71_v5 = vpack.c.bf16 %v70_v4, %v69_v3  ;;  %v390_v6 = vld [vmem:[#allocation7] sm:$0xff]   ;;  %v391_v7 = vld [vmem:[#allocation7 + $0x8] sm:$0xff]   ;;  %v393_v9 = vld [vmem:[#allocation7 + $0x18] sm:$0xff]   ;;  %s514_s20 = smov [#allocation8]   ;;  %vm307_vm3 = vcmask 123904  }
  0x3a   :  { %351 = vmatpush3.bf16.msra.mxu0 %v388_v1  ;;  %359 = vmatpush3.bf16.msra.mxu1 %v390_v6  ;;  %v325_v10 = vld [vmem:[%s626_s2] ss:$0 sm:$0xff]  ;;  %s315_s21 = sshll.u32 %s514_s20, 4  ;;  %s316_s21 = int_to_ptr.vmem [resolvable:$true] %s315_s21 }
  0x3b   :  { %352 = vmatprep.subr.bf16.mxu0 %v511_v0  ;;  %360 = vmatprep.subr.bf16.mxu1 %v511_v0  ;;  %v255_v28 = vld [vmem:[%s630_s6] sm:$0x3]  ;;  %s476_s22 = scalar_lea.vmem %s316_s21, 32  ;;  %p481_p11 = scmp.lt.s32.totalorder %s316_s21, %s316_s21 }
  0x3c   :  { %387 = vset.pattern.permute.xlu0 %v513_v29  ;;  %v331_v30 = vld [vmem:[%s628_s4] ss:$0 sm:$0xff]  ;;  %p477_p10 = scmp.ne.s32.totalorder %s316_s21, %s476_s22  ;;  %p482_p12 = scmp.lt.s32.totalorder %s476_s22, %s476_s22 }
  0x3d   :  { %258 = vperm.xlu0 %387, %v255_v28   ;;  %v253_v49 = vld [vmem:[%s629_s5] sm:$0x1] }
  0x3e   :  { %353 = vmatpush3.bf16.msra.mxu0 %v389_v2  ;;  %361 = vmatpush3.bf16.msra.mxu1 %v391_v7  ;;  %p483_p13 = por %p482_p12, %p481_p11 }
  0x3f   :  { %370 = vmatprep.subr.bf16.mxu0 %v511_v0  ;;  %362 = vmatprep.subr.bf16.mxu1 %v511_v0 }
  0x40   :  { %p484_p0 = pnand %p483_p13, %p477_p10 }
  0x41   :  { %355 = vmatmul.mubr.msk.bf16.vlgmr.msra.gmra.mrb[0].mxu0 %vm95_vm1, %v71_v5 }
  0x42   :  { %372 = vmatprep.mubr.msk.bf16.mxu0 %vm512_vm0, %v511_v0  ;;  %363 = vmatpush3.bf16.msra.mxu1 %v392_v8 }
  0x43   :  { %364 = vmatprep.subr.bf16.mxu1 %v511_v0 }
  0x46   :  { %365 = vmatpush3.bf16.msra.mxu1 %v393_v9 }
  0xbc   :  { %v259_v50 = vpop.permute.xlu0 %258 }
 0x114   :  { %v133_v11 = vpop.f32.mrb[0].mxu0 }
 0x115   :  { %v134_v12 = vadd.f32 %v325_v10, %v133_v11  ;;  %v356_v13 = vpop.f32.mrb[1].mxu0 }
 0x116   :  { %v136_v14 = vpop.f32.mrb[2].mxu0 }
 0x117   :  { %v329_v15 = vmul.f32 -1.442695, %v134_v12  ;;  %v137_v16 = vadd.f32 %v325_v10, %v136_v14  ;;  %v357_v17 = vpop.f32.mrb[3].mxu0 }
 0x119   :  { %394 = vpow2.f32 %v329_v15  ;;  %v330_v18 = vmul.f32 -1.442695, %v137_v16 }
 0x11b   :  { %396 = vpow2.f32 %v330_v18 }
 0x123   :  { %v395_v19 = vpop.eup %394 }
 0x124   :  { %v146_v20 = vadd.f32 1.0, %v395_v19 }
 0x125   :  { %v397_v21 = vpop.eup %396 }
 0x126   :  { %398 = vrcp.f32 %v146_v20  ;;  %v147_v22 = vadd.f32 1.0, %v397_v21 }
 0x128   :  { %400 = vrcp.f32 %v147_v22 }
 0x130   :  { %v399_v23 = vpop.eup %398 }
 0x131   :  { %v152_v25 = vmul.f32 %v399_v23, %v134_v12 }
 0x132   :  { %v401_v24 = vpop.eup %400 }
 0x133   :  { %v153_v26 = vmul.f32 %v401_v24, %v137_v16 }
 0x135   :  { %v154_v27 = vpack.c.bf16 %v153_v26, %v152_v25 }
 0x137   :  { %367 = vmatmul.mubr.msk.bf16.vlgmr.msra.gmra.mrb[0].mxu1 %vm194_vm2, %v154_v27 }
 0x20a   :  { %v232_v31 = vpop.f32.mrb[0].mxu1 }
 0x20b   :  { %v233_v32 = vadd.f32 %v331_v30, %v232_v31  ;;  %v368_v33 = vpop.f32.mrb[1].mxu1 }
 0x20c   :  { %v235_v34 = vpop.f32.mrb[2].mxu1 }
 0x20d   :  { %v337_v35 = vmul.f32 -1.442695, %v233_v32  ;;  %v236_v36 = vadd.f32 %v331_v30, %v235_v34  ;;  %v369_v37 = vpop.f32.mrb[3].mxu1 }
 0x20f   :  { %402 = vpow2.f32 %v337_v35  ;;  %v338_v38 = vmul.f32 -1.442695, %v236_v36 }
 0x211   :  { %404 = vpow2.f32 %v338_v38 }
 0x219   :  { %v403_v39 = vpop.eup %402 }
 0x21a   :  { %v245_v40 = vadd.f32 1.0, %v403_v39 }
 0x21b   :  { %v405_v41 = vpop.eup %404 }
 0x21c   :  { %406 = vrcp.f32 %v245_v40  ;;  %v246_v42 = vadd.f32 1.0, %v405_v41 }
 0x21e   :  { %408 = vrcp.f32 %v246_v42 }
 0x226   :  { %v407_v43 = vpop.eup %406 }
 0x227   :  { %v251_v45 = vmul.f32 %v407_v43, %v233_v32 }
 0x228   :  { %v409_v44 = vpop.eup %408 }
 0x229   :  { %v252_v46 = vmul.f32 %v409_v44, %v236_v36 }
 0x22b   :  { %v254_v47 = vpack.c.bf16 %v252_v46, %v251_v45 }
 0x22d   :  { %v265_v48 = vsel %vm194_vm2, %v254_v47, 0 }
 0x22e   :  { %371 = vmatpush3.bf16.xpose.msra.mxu0 %v265_v48 }
 0x235   :  { %373 = vmatmul.mubr.msk.bf16.vlgmr.msra.gmra.mrb[4].mxu0 %vm194_vm2, %v253_v49 }
 0x308   :  { %v301_v51 = vpop.f32.mrb[4].mxu0 }
 0x309   :  { %v302_v52 = vadd.f32 %v301_v51, %v259_v50  ;;  %v374_v53 = vpop.f32.mrb[5].mxu0 }
 0x30a   :  { %v304_v54 = vpop.f32.mrb[6].mxu0 }
 0x30b   :  { %v375_v55 = vpop.f32.mrb[7].mxu0  ;;  %308 = vst.msk [vmem:[#allocation8] sm:$0x3] %vm307_vm3, %v302_v52 }
 0x30c   :  { %487 = shalt.err (!%p484_p0)
}
 0x30d   :  { %s488_s24 = scalar_lea.hbm %s631_s7, 32 }
 0x30e   :  { %p489_p1 = scmp.ne.s32.totalorder %s631_s7, %s488_s24  ;;  %p492_p2 = scmp.lt.u32.totalorder %s488_s24, %s631_s7 }
 0x310   :  { %p494_p3 = pnand %p492_p2, %p489_p1 }
 0x312   :  { %497 = shalt.err (!%p494_p3)
}
 0x313   :  { %318 = dma.vmem_to_hbm [thread:$0]  %s316_s21, 32, %s631_s7, [#allocation4]  }
 0x314   :  { %502 = dma.done.wait [#allocation4], 32  }
 0x315   :  { %503 = vsyncadd [#allocation4], 4294967264 }
 0x316   :  { %322 = vsyncpa [#allocation3], 1 }
 0x317   :  { %323 = vsyncpa [#allocation6], 1 }
 0x318   :  { %324 = vsyncpa [#allocation4], 1 }

</bundles_post_ra>
